<compile_context>
chip_gen: v7x
topology: tpu7x:2x2x1
jax: 0.10.0
libtpu: 0.0.40
codegen_flags: <defaults>
</compile_context>

<pallas_src>
import math
import numpy as np
import jax
import jax.numpy as jnp
from jax.experimental import pallas as pl
from jax.experimental.pallas import tpu as pltpu


# ------------------------- filter construction (host-side) -------------------

def _kaiser_window(kernel_size, beta):
    n = np.arange(kernel_size, dtype=np.float64)
    alpha = (kernel_size - 1) / 2.0
    ratio = (n - alpha) / alpha
    w = np.i0(beta * np.sqrt(np.clip(1.0 - ratio ** 2, 0.0, None))) / np.i0(beta)
    return w


def _sinc(x):
    return np.where(x == 0.0, 1.0, np.sin(np.pi * x) / (np.pi * x))


def kaiser_sinc_filter1d(cutoff, half_width, kernel_size):
    even = (kernel_size % 2 == 0)
    half_size = kernel_size // 2
    delta_f = 4 * half_width
    A = 2.285 * (half_size - 1) * math.pi * delta_f + 7.95
    if A > 50.0:
        beta = 0.1102 * (A - 8.7)
    elif A >= 21.0:
        beta = 0.5842 * (A - 21.0) ** 0.4 + 0.07886 * (A - 21.0)
    else:
        beta = 0.0
    window = _kaiser_window(kernel_size, beta)
    if even:
        time = np.arange(-half_size, half_size, dtype=np.float64) + 0.5
    else:
        time = np.arange(kernel_size, dtype=np.float64) - half_size
    if cutoff == 0:
        filt = np.zeros_like(time)
    else:
        filt = 2 * cutoff * window * _sinc(2 * cutoff * time)
        filt = filt / filt.sum()
    return filt.astype(np.float32)  # [K]


def _round_up(x, m):
    return ((x + m - 1) // m) * m


# ------------------------------ Pallas kernel --------------------------------

def _make_conv_kernel(f2, stride, q_taps, tn):
    """Direct polyphase depthwise conv: K scalar-constant FMAs on the VPU.

    f2[r, q] = filt[q*stride + r] (zero-padded).  cur_ref holds the current
    output tile's phase window (stride, tm, tn); nxt_ref holds the first 128
    columns of the next tile (for the q >= 1 cross-tile taps).
    """
    def kernel(cur_ref, nxt_ref, o_ref):
        acc = jnp.zeros(o_ref.shape, jnp.float32)
        for r in range(stride):
            # (tm, tn + 128); both pieces are lane-aligned (128-multiples).
            xr = jnp.concatenate([cur_ref[r], nxt_ref[r]], axis=-1)
            xr = xr.astype(jnp.float32)
            for q in range(q_taps):
                c = float(f2[r, q])
                if c == 0.0:
                    continue
                acc = acc + c * xr[:, q:q + tn]   # static (shifted) window
        o_ref[...] = acc.astype(o_ref.dtype)

    return kernel


def downsample1d(x, ratio=2, kernel_size=None):
    """x: [B, C, T] -> [B, C, T_out] with T_out = ceil(T / ratio)
    (exactly T // ratio when ratio divides T), matching the PyTorch module."""
    B, C, T = x.shape
    K = int(6 * ratio // 2) * 2 if kernel_size is None else kernel_size
    stride = ratio
    even = (K % 2 == 0)
    pad_left = K // 2 - int(even)
    pad_right = K // 2

    filt = kaiser_sinc_filter1d(0.5 / ratio, 0.6 / ratio, K)  # np [K]

    # Polyphase tap table: f2[r, q] = filt[q*stride + r]  (zero-padded).
    q_taps = -(-K // stride)  # ceil(K / stride)
    assert q_taps <= 128, "unsupported kernel_size/stride combination"
    f2 = np.zeros((stride, q_taps), np.float32)
    for k in range(K):
        f2[k % stride, k // stride] = filt[k]

    T_pad = T + pad_left + pad_right
    T_out = (T_pad - K) // stride + 1          # = ceil(T / ratio)

    # ---- tiling (lane-dense output, sublane-aligned M) ----
    M = B * C
    tm = min(256, _round_up(M, 8))
    M_pad = _round_up(M, tm)
    n_m = M_pad // tm

    tn = min(512, _round_up(max(T_out, 1), 128))
    n_t = -(-T_out // tn)
    T_out_pad = n_t * tn
    S_pad = T_out_pad + 128                    # room for the "next tile" taps
    T_pp = S_pad * stride

    # ---- replicate pad + polyphase split (single fused XLA pass) ----
    x2 = x.reshape(M, T)
    x_tp = jnp.pad(x2, ((0, 0), (pad_left, pad_right)), mode="edge")
    x_tp = jnp.pad(x_tp, ((0, M_pad - M), (0, T_pp - T_pad)))          # zeros
    # phases[r, m, s] = x_pad[m, s*stride + r]
    phases = x_tp.reshape(M_pad, S_pad, stride).transpose(2, 0, 1)

    kernel = _make_conv_kernel(f2, stride, q_taps, tn)

    itemsize = np.dtype(x.dtype).itemsize
    cost = pl.CostEstimate(
        flops=2 * M * T_out * K,
        transcendentals=0,
        bytes_accessed=(M * T + M * T_out) * itemsize,
    )

    out = pl.pallas_call(
        kernel,
        out_shape=jax.ShapeDtypeStruct((M_pad, T_out_pad), x.dtype),
        grid=(n_m, n_t),
        in_specs=[
            # current output tile's phase window
            pl.BlockSpec((stride, tm, tn), lambda i, j: (0, i, j)),
            # first 128 columns of the next tile (cross-tile taps)
            pl.BlockSpec((stride, tm, 128),
                         lambda i, j: (0, i, (j + 1) * (tn // 128))),
        ],
        out_specs=pl.BlockSpec((tm, tn), lambda i, j: (i, j)),
        compiler_params=pltpu.CompilerParams(
            dimension_semantics=("parallel", "parallel")),
        cost_estimate=cost,
    )(phases, phases)

    return out[:M, :T_out].reshape(B, C, T_out)


# ------------------------------ reference (numpy) -----------------------------

def _downsample1d_ref(x_np, ratio=2):
    ksz = int(6 * ratio // 2) * 2
    filt = kaiser_sinc_filter1d(0.5 / ratio, 0.6 / ratio, ksz)
    stride = ratio
    even = (ksz % 2 == 0)
    pad_left = ksz // 2 - int(even)
    pad_right = ksz // 2
    x_pad = np.pad(x_np, ((0, 0), (0, 0), (pad_left, pad_right)), mode="edge")
    B, C, Tp = x_pad.shape
    T_out = (Tp - ksz) // stride + 1
    out = np.zeros((B, C, T_out), dtype=np.float32)
    for t in range(T_out):
        out[:, :, t] = (x_pad[:, :, t * stride: t * stride + ksz] * filt).sum(-1)
    return out


if __name__ == "__main__":
    key = jax.random.PRNGKey(0)
    B, C, T, ratio = 2, 4, 16, 2
    x = jax.random.normal(key, (B, C, T), dtype=jnp.float32)

    y = jax.block_until_ready(downsample1d(x, ratio=ratio))

    ref = _downsample1d_ref(np.asarray(x), ratio=ratio)
    assert y.shape == ref.shape, (y.shape, ref.shape)
    np.testing.assert_allclose(np.asarray(y), ref, rtol=1e-4, atol=1e-5)

    print("KERNEL_OK")
</pallas_src>

<mosaic_0001>
module attributes {stable_mosaic.version = 11 : i64} {
  func.func @kernel(%arg0: i32, %arg1: i32, %arg2: memref<2x8x128xf32, #tpu.memory_space<vmem>>, %arg3: memref<2x8x128xf32, #tpu.memory_space<vmem>>, %arg4: memref<8x128xf32, #tpu.memory_space<vmem>>) attributes {dimension_semantics = [#tpu.dimension_semantics<parallel>, #tpu.dimension_semantics<parallel>], iteration_bounds = array<i64: 1, 1>, scalar_prefetch = 0 : i64, scratch_operands = 0 : i64, tpu.core_type = #tpu.core_type<tc>, window_params = [{transform_indices = @transform_0, window_bounds = array<i64: 2, 8, 128>}, {transform_indices = @transform_1, window_bounds = array<i64: 2, 8, 128>}, {transform_indices = @transform_2, window_bounds = array<i64: 8, 128>}]} {
    %cst = arith.constant 0.000000e+00 : f32
    %0 = vector.broadcast %cst : f32 to vector<8x128xf32>
    %c0 = arith.constant 0 : index
    %c0_0 = arith.constant 0 : index
    %c0_1 = arith.constant 0 : index
    %1 = vector.load %arg2[%c0, %c0_0, %c0_1] : memref<2x8x128xf32, #tpu.memory_space<vmem>>, vector<1x8x128xf32>
    %2 = vector.shape_cast %1 : vector<1x8x128xf32> to vector<8x128xf32>
    %c0_2 = arith.constant 0 : index
    %c0_3 = arith.constant 0 : index
    %c0_4 = arith.constant 0 : index
    %3 = vector.load %arg3[%c0_2, %c0_3, %c0_4] : memref<2x8x128xf32, #tpu.memory_space<vmem>>, vector<1x8x128xf32>
    %4 = vector.shape_cast %3 : vector<1x8x128xf32> to vector<8x128xf32>
    %5 = tpu.concatenate %2, %4 in 1 : vector<8x128xf32>, vector<8x128xf32> -> vector<8x256xf32>
    %6 = vector.extract_strided_slice %5 {offsets = [0, 0], sizes = [8, 128], strides = [1, 1]} : vector<8x256xf32> to vector<8x128xf32>
    %cst_5 = arith.constant 0.00202896656 : f32
    %7 = vector.broadcast %cst_5 : f32 to vector<8x128xf32>
    %8 = arith.mulf %7, %6 : vector<8x128xf32>
    %9 = arith.addf %0, %8 : vector<8x128xf32>
    %10 = vector.extract_strided_slice %5 {offsets = [0, 1], sizes = [8, 128], strides = [1, 1]} : vector<8x256xf32> to vector<8x128xf32>
    %cst_6 = arith.constant -0.0255434643 : f32
    %11 = vector.broadcast %cst_6 : f32 to vector<8x128xf32>
    %12 = arith.mulf %11, %10 : vector<8x128xf32>
    %13 = arith.addf %9, %12 : vector<8x128xf32>
    %14 = vector.extract_strided_slice %5 {offsets = [0, 2], sizes = [8, 128], strides = [1, 1]} : vector<8x256xf32> to vector<8x128xf32>
    %cst_7 = arith.constant 0.128572613 : f32
    %15 = vector.broadcast %cst_7 : f32 to vector<8x128xf32>
    %16 = arith.mulf %15, %14 : vector<8x128xf32>
    %17 = arith.addf %13, %16 : vector<8x128xf32>
    %18 = vector.extract_strided_slice %5 {offsets = [0, 3], sizes = [8, 128], strides = [1, 1]} : vector<8x256xf32> to vector<8x128xf32>
    %cst_8 = arith.constant 0.443209797 : f32
    %19 = vector.broadcast %cst_8 : f32 to vector<8x128xf32>
    %20 = arith.mulf %19, %18 : vector<8x128xf32>
    %21 = arith.addf %17, %20 : vector<8x128xf32>
    %22 = vector.extract_strided_slice %5 {offsets = [0, 4], sizes = [8, 128], strides = [1, 1]} : vector<8x256xf32> to vector<8x128xf32>
    %cst_9 = arith.constant -0.0576573759 : f32
    %23 = vector.broadcast %cst_9 : f32 to vector<8x128xf32>
    %24 = arith.mulf %23, %22 : vector<8x128xf32>
    %25 = arith.addf %21, %24 : vector<8x128xf32>
    %26 = vector.extract_strided_slice %5 {offsets = [0, 5], sizes = [8, 128], strides = [1, 1]} : vector<8x256xf32> to vector<8x128xf32>
    %cst_10 = arith.constant 0.00938946381 : f32
    %27 = vector.broadcast %cst_10 : f32 to vector<8x128xf32>
    %28 = arith.mulf %27, %26 : vector<8x128xf32>
    %29 = arith.addf %25, %28 : vector<8x128xf32>
    %c1 = arith.constant 1 : index
    %c0_11 = arith.constant 0 : index
    %c0_12 = arith.constant 0 : index
    %30 = vector.load %arg2[%c1, %c0_11, %c0_12] : memref<2x8x128xf32, #tpu.memory_space<vmem>>, vector<1x8x128xf32>
    %31 = vector.shape_cast %30 : vector<1x8x128xf32> to vector<8x128xf32>
    %c1_13 = arith.constant 1 : index
    %c0_14 = arith.constant 0 : index
    %c0_15 = arith.constant 0 : index
    %32 = vector.load %arg3[%c1_13, %c0_14, %c0_15] : memref<2x8x128xf32, #tpu.memory_space<vmem>>, vector<1x8x128xf32>
    %33 = vector.shape_cast %32 : vector<1x8x128xf32> to vector<8x128xf32>
    %34 = tpu.concatenate %31, %33 in 1 : vector<8x128xf32>, vector<8x128xf32> -> vector<8x256xf32>
    %35 = vector.extract_strided_slice %34 {offsets = [0, 0], sizes = [8, 128], strides = [1, 1]} : vector<8x256xf32> to vector<8x128xf32>
    %cst_16 = arith.constant 0.00938946381 : f32
    %36 = vector.broadcast %cst_16 : f32 to vector<8x128xf32>
    %37 = arith.mulf %36, %35 : vector<8x128xf32>
    %38 = arith.addf %29, %37 : vector<8x128xf32>
    %39 = vector.extract_strided_slice %34 {offsets = [0, 1], sizes = [8, 128], strides = [1, 1]} : vector<8x256xf32> to vector<8x128xf32>
    %cst_17 = arith.constant -0.0576573759 : f32
    %40 = vector.broadcast %cst_17 : f32 to vector<8x128xf32>
    %41 = arith.mulf %40, %39 : vector<8x128xf32>
    %42 = arith.addf %38, %41 : vector<8x128xf32>
    %43 = vector.extract_strided_slice %34 {offsets = [0, 2], sizes = [8, 128], strides = [1, 1]} : vector<8x256xf32> to vector<8x128xf32>
    %cst_18 = arith.constant 0.443209797 : f32
    %44 = vector.broadcast %cst_18 : f32 to vector<8x128xf32>
    %45 = arith.mulf %44, %43 : vector<8x128xf32>
    %46 = arith.addf %42, %45 : vector<8x128xf32>
    %47 = vector.extract_strided_slice %34 {offsets = [0, 3], sizes = [8, 128], strides = [1, 1]} : vector<8x256xf32> to vector<8x128xf32>
    %cst_19 = arith.constant 0.128572613 : f32
    %48 = vector.broadcast %cst_19 : f32 to vector<8x128xf32>
    %49 = arith.mulf %48, %47 : vector<8x128xf32>
    %50 = arith.addf %46, %49 : vector<8x128xf32>
    %51 = vector.extract_strided_slice %34 {offsets = [0, 4], sizes = [8, 128], strides = [1, 1]} : vector<8x256xf32> to vector<8x128xf32>
    %cst_20 = arith.constant -0.0255434643 : f32
    %52 = vector.broadcast %cst_20 : f32 to vector<8x128xf32>
    %53 = arith.mulf %52, %51 : vector<8x128xf32>
    %54 = arith.addf %50, %53 : vector<8x128xf32>
    %55 = vector.extract_strided_slice %34 {offsets = [0, 5], sizes = [8, 128], strides = [1, 1]} : vector<8x256xf32> to vector<8x128xf32>
    %cst_21 = arith.constant 0.00202896656 : f32
    %56 = vector.broadcast %cst_21 : f32 to vector<8x128xf32>
    %57 = arith.mulf %56, %55 : vector<8x128xf32>
    %58 = arith.addf %54, %57 : vector<8x128xf32>
    %c0_22 = arith.constant 0 : index
    %c0_23 = arith.constant 0 : index
    %59 = vector.load %arg4[%c0_22, %c0_23] : memref<8x128xf32, #tpu.memory_space<vmem>>, vector<8x128xf32>
    tpu.vector_store %arg4[%c0_22, %c0_23], %58 {strides = array<i32>} : memref<8x128xf32, #tpu.memory_space<vmem>>, vector<8x128xf32>,
    return
  }
  func.func @transform_0(%arg0: i32, %arg1: i32) -> (i32, i32, i32) {
    %c0_i32 = arith.constant 0 : i32
    %c0_i32_0 = arith.constant 0 : i32
    return %c0_i32, %arg0, %arg1 : i32, i32, i32
  }
  func.func @transform_1(%arg0: i32, %arg1: i32) -> (i32, i32, i32) {
    %c1_i32 = arith.constant 1 : i32
    %0 = arith.addi %arg1, %c1_i32 : i32
    %c1_i32_0 = arith.constant 1 : i32
    %1 = arith.muli %0, %c1_i32_0 : i32
    %c0_i32 = arith.constant 0 : i32
    %c0_i32_1 = arith.constant 0 : i32
    return %c0_i32, %arg0, %1 : i32, i32, i32
  }
  func.func @transform_2(%arg0: i32, %arg1: i32) -> (i32, i32) {
    %c0_i32 = arith.constant 0 : i32
    return %arg0, %arg1 : i32, i32
  }
}

</mosaic_0001>

<bundles_post_ra>
// kernel: tpu_custom_call.1
= control target key start
LH: loop header
LB: loop body
LE: loop exit
PB: predicated region body
PF: predicated region fallthrough
CT: control target
= control target key end

     0   :  { %7 = vsyncpa [#allocation3], 0  ;;  %s352_s0 = inlined_call_operand.hbm [shape: f32[2,8,256], index: 0, kind: input, shape index: {}]   ;;  %s353_s1 = inlined_call_operand.hbm [shape: f32[2,8,256], index: 1, kind: input, shape index: {}]   ;;  %s354_s2 = inlined_call_operand.hbm [shape: f32[8,128], index: 2, kind: output, shape index: {}]  }
   0x1   :  { %8 = vsyncpa [#allocation6], 0 }
   0x2   :  { %9 = vsyncpa [#allocation4], 0  ;;  %s273_s9 = smov [#allocation2]   ;;  %s198_s13 = scalar_lea.hbm %s352_s0, 256 }
   0x3   :  { %s15_s10 = sshll.u32 %s273_s9, 4  ;;  %p199_p0 = scmp.ne.s32.totalorder %s352_s0, %s198_s13  ;;  %s16_s10 = int_to_ptr.vmem [resolvable:$true] %s15_s10 }
   0x4   :  { %s200_s18 = scalar_lea.hbm %s352_s0, 512  ;;  %p202_p2 = scmp.lt.u32.totalorder %s198_s13, %s352_s0 }
   0x5   :  { %p201_p1 = scmp.lt.u32.totalorder %s200_s18, %s198_s13 }
   0x7   :  { %p203_p3 = por %p202_p2, %p201_p1 }
   0x9   :  { %p204_p4 = pnand %p203_p3, %p199_p0 }
   0xb   :  { %207 = shalt.err (!%p204_p4)
}
   0xc   :  { %s208_s21 = scalar_lea.vmem %s16_s10, 256  ;;  %p213_p6 = scmp.lt.s32.totalorder %s16_s10, %s16_s10 }
   0xd   :  { %p209_p5 = scmp.ne.s32.totalorder %s16_s10, %s208_s21  ;;  %p214_p7 = scmp.lt.s32.totalorder %s208_s21, %s208_s21 }
   0xf   :  { %p215_p8 = por %p214_p7, %p213_p6 }
  0x11   :  { %p216_p9 = pnand %p215_p8, %p209_p5 }
  0x13   :  { %219 = shalt.err (!%p216_p9)
}
  0x14   :  { %s274_s22 = smov 256   ;;  %s275_s23 = smov 128  }
  0x15   :  { %s276_s24 = smov 8   ;;  %s186_s29 = scalar_lea.hbm %s353_s1, 128 }
  0x16   :  { %21 = dma.hbm_to_vmem [thread:$0]  %s352_s0, 256, %s16_s10, [#allocation3], %s274_s22, %s275_s23, %s276_s24  }
  0x17   :  { %s277_s30 = smov [#allocation5]   ;;  %s244_s6 = scalar_lea.hbm %s353_s1, 384 }
  0x18   :  { %s30_s3 = sshll.u32 %s277_s30, 4  ;;  %p221_p10 = scmp.ne.s32.totalorder %s186_s29, %s244_s6  ;;  %s31_s3 = int_to_ptr.vmem [resolvable:$true] %s30_s3 }
  0x19   :  { %s222_s9 = scalar_lea.hbm %s353_s1, 512  ;;  %p223_p11 = scmp.lt.u32.totalorder %s186_s29, %s353_s1 }
  0x1a   :  { %p224_p12 = scmp.lt.u32.totalorder %s222_s9, %s244_s6  ;;  %p226_p0 = scmp.lt.u32.totalorder %s244_s6, %s186_s29 }
  0x1c   :  { %p225_p13 = por %p224_p12, %p223_p11 }
  0x1e   :  { %p227_p1 = por %p226_p0, %p225_p13 }
  0x20   :  { %p228_p2 = pnand %p227_p1, %p221_p10 }
  0x22   :  { %231 = shalt.err (!%p228_p2)
}
  0x23   :  { %s232_s0 = scalar_lea.vmem %s31_s3, 256  ;;  %p237_p4 = scmp.lt.s32.totalorder %s31_s3, %s31_s3 }
  0x24   :  { %p233_p3 = scmp.ne.s32.totalorder %s31_s3, %s232_s0  ;;  %p238_p5 = scmp.lt.s32.totalorder %s232_s0, %s232_s0 }
  0x26   :  { %p239_p6 = por %p238_p5, %p237_p4 }
  0x28   :  { %p240_p7 = pnand %p239_p6, %p233_p3 }
  0x2a   :  { %243 = shalt.err (!%p240_p7)
}
  0x2b   :  { %36 = dma.hbm_to_vmem [thread:$0]  %s186_s29, 256, %s31_s3, [#allocation6], %s274_s22, %s275_s23, %s276_s24  }
  0x2c   :  { %267 = dma.done.wait [#allocation3], 256  }
  0x2d   :  { %268 = vsyncadd [#allocation3], 4294967040 }
  0x2e   :  { %269 = dma.done.wait [#allocation6], 256  }
  0x2f   :  { %270 = vsyncadd [#allocation6], 4294967040  ;;  %v44_v0 = vld [vmem:[#allocation2] sm:$0xff]  ;;  %v45_v1 = vld [vmem:[#allocation5] sm:$0xff]  ;;  %s278_s1 = smov 126   ;;  %s279_s10 = smov 127  }
  0x30   :  { %v60_v2 = vmul.f32 0.12857261, %v44_v0  ;;  %v48_v3 = vmul.f32 -0.025543464, %v44_v0  ;;  %v61_v4 = vmul.f32 0.12857261, %v45_v1 }
  0x31   :  { %v49_v5 = vmul.f32 -0.025543464, %v45_v1  ;;  %v73_v6 = vmul.f32 0.4432098, %v45_v1  ;;  %v72_v7 = vmul.f32 0.4432098, %v44_v0 }
  0x32   :  { %64 = vrot.lane.b32.xlu1 %v60_v2, %s278_s1  ;;  %52 = vrot.lane.b32.xlu0 %v48_v3, %s279_s10  ;;  %s280_s13 = smov 125   ;;  %v85_v8 = vmul.f32 -0.057657376, %v45_v1  ;;  %v84_v9 = vmul.f32 -0.057657376, %v44_v0  ;;  %s281_s14 = smov 124  }
  0x33   :  { %v97_v10 = vmul.f32 0.009389464, %v45_v1  ;;  %v96_v11 = vmul.f32 0.009389464, %v44_v0  ;;  %v111_v12 = vld [vmem:[#allocation5 + $0x8] sm:$0xff]  ;;  %v109_v13 = vld [vmem:[#allocation2 + $0x8] sm:$0xff] }
  0x34   :  { %s282_s15 = smov 123   ;;  %v115_v14 = vmul.f32 -0.057657376, %v111_v12  ;;  %v114_v15 = vmul.f32 -0.057657376, %v109_v13  ;;  %vm56_vm0 = vcmask 1039360  }
  0x35   :  { %v126_v16 = vmul.f32 0.4432098, %v111_v12  ;;  %v125_v17 = vmul.f32 0.4432098, %v109_v13  ;;  %v137_v18 = vmul.f32 0.12857261, %v111_v12 }
  0x36   :  { %66 = vrot.lane.b32.xlu1 %v61_v4, %s278_s1  ;;  %54 = vrot.lane.b32.xlu0 %v49_v5, %s279_s10  ;;  %v136_v19 = vmul.f32 0.12857261, %v109_v13  ;;  %v148_v20 = vmul.f32 -0.025543464, %v111_v12  ;;  %v147_v21 = vmul.f32 -0.025543464, %v109_v13 }
  0x37   :  { %v159_v22 = vmul.f32 0.0020289666, %v111_v12  ;;  %v158_v23 = vmul.f32 0.0020289666, %v109_v13  ;;  %v46_v26 = vmul.f32 0.0020289666, %v44_v0 }
  0x38   :  { %vm68_vm1 = vcmask 1031168   ;;  %vm80_vm2 = vcmask 1022976   ;;  %vm92_vm3 = vcmask 1014784   ;;  %vm104_vm4 = vcmask 1006592   ;;  %s283_s16 = smov [#allocation7]  }
  0x39   :  { %v112_v43 = vmul.f32 0.009389464, %v109_v13  ;;  %s176_s17 = sshll.u32 %s283_s16, 4  ;;  %s177_s17 = int_to_ptr.vmem [resolvable:$true] %s176_s17 }
  0x3a   :  { %78 = vrot.lane.b32.xlu1 %v73_v6, %s280_s13  ;;  %76 = vrot.lane.b32.xlu0 %v72_v7, %s280_s13  ;;  %s245_s18 = scalar_lea.vmem %s177_s17, 128  ;;  %p250_p9 = scmp.lt.s32.totalorder %s177_s17, %s177_s17 }
  0x3b   :  { %p246_p8 = scmp.ne.s32.totalorder %s177_s17, %s245_s18  ;;  %p251_p10 = scmp.lt.s32.totalorder %s245_s18, %s245_s18 }
  0x3d   :  { %p252_p11 = por %p251_p10, %p250_p9 }
  0x3e   :  { %90 = vrot.lane.b32.xlu1 %v85_v8, %s281_s14  ;;  %88 = vrot.lane.b32.xlu0 %v84_v9, %s281_s14 }
  0x3f   :  { %p253_p12 = pnand %p252_p11, %p246_p8 }
  0x42   :  { %102 = vrot.lane.b32.xlu1 %v97_v10, %s282_s15  ;;  %100 = vrot.lane.b32.xlu0 %v96_v11, %s282_s15 }
  0x46   :  { %120 = vrot.lane.b32.xlu1 %v115_v14, %s279_s10  ;;  %118 = vrot.lane.b32.xlu0 %v114_v15, %s279_s10 }
  0x4a   :  { %131 = vrot.lane.b32.xlu1 %v126_v16, %s278_s1  ;;  %129 = vrot.lane.b32.xlu0 %v125_v17, %s278_s1 }
  0x4e   :  { %142 = vrot.lane.b32.xlu1 %v137_v18, %s280_s13  ;;  %140 = vrot.lane.b32.xlu0 %v136_v19, %s280_s13 }
  0x52   :  { %153 = vrot.lane.b32.xlu1 %v148_v20, %s281_s14  ;;  %151 = vrot.lane.b32.xlu0 %v147_v21, %s281_s14 }
  0x56   :  { %164 = vrot.lane.b32.xlu1 %v159_v22, %s282_s15  ;;  %162 = vrot.lane.b32.xlu0 %v158_v23, %s282_s15 }
  0xa4   :  { %v65_v24 = vpop.permute.xlu1 %64  ;;  %v53_v25 = vpop.permute.xlu0 %52 }
  0xa8   :  { %v67_v27 = vpop.permute.xlu1 %66  ;;  %v55_v28 = vpop.permute.xlu0 %54 }
  0xa9   :  { %v57_v29 = vsel %vm56_vm0, %v53_v25, %v55_v28  ;;  %v69_v33 = vsel %vm68_vm1, %v65_v24, %v67_v27 }
  0xaa   :  { %v59_v30 = vadd.f32 %v57_v29, %v46_v26 }
  0xac   :  { %v79_v31 = vpop.permute.xlu1 %78  ;;  %v77_v32 = vpop.permute.xlu0 %76  ;;  %v71_v34 = vadd.f32 %v69_v33, %v59_v30 }
  0xad   :  { %v81_v35 = vsel %vm80_vm2, %v77_v32, %v79_v31 }
  0xae   :  { %v83_v39 = vadd.f32 %v81_v35, %v71_v34 }
  0xb0   :  { %v91_v36 = vpop.permute.xlu1 %90  ;;  %v89_v37 = vpop.permute.xlu0 %88 }
  0xb1   :  { %v93_v38 = vsel %vm92_vm3, %v89_v37, %v91_v36 }
  0xb2   :  { %v95_v40 = vadd.f32 %v93_v38, %v83_v39 }
  0xb4   :  { %v103_v41 = vpop.permute.xlu1 %102  ;;  %v101_v42 = vpop.permute.xlu0 %100 }
  0xb5   :  { %v105_v44 = vsel %vm104_vm4, %v101_v42, %v103_v41 }
  0xb6   :  { %v107_v45 = vadd.f32 %v105_v44, %v95_v40 }
  0xb8   :  { %v121_v46 = vpop.permute.xlu1 %120  ;;  %v119_v47 = vpop.permute.xlu0 %118  ;;  %v113_v48 = vadd.f32 %v112_v43, %v107_v45 }
  0xb9   :  { %v122_v51 = vsel %vm56_vm0, %v119_v47, %v121_v46 }
  0xba   :  { %v124_v55 = vadd.f32 %v122_v51, %v113_v48 }
  0xbc   :  { %v132_v49 = vpop.permute.xlu1 %131  ;;  %v130_v50 = vpop.permute.xlu0 %129 }
  0xbd   :  { %v133_v54 = vsel %vm68_vm1, %v130_v50, %v132_v49 }
  0xbe   :  { %v135_v57 = vadd.f32 %v133_v54, %v124_v55 }
  0xc0   :  { %v143_v52 = vpop.permute.xlu1 %142  ;;  %v141_v53 = vpop.permute.xlu0 %140 }
  0xc1   :  { %v144_v56 = vsel %vm80_vm2, %v141_v53, %v143_v52 }
  0xc2   :  { %v146_v61 = vadd.f32 %v144_v56, %v135_v57 }
  0xc4   :  { %v154_v58 = vpop.permute.xlu1 %153  ;;  %v152_v59 = vpop.permute.xlu0 %151 }
  0xc5   :  { %v155_v60 = vsel %vm92_vm3, %v152_v59, %v154_v58 }
  0xc6   :  { %v157_v62 = vadd.f32 %v155_v60, %v146_v61 }
  0xc8   :  { %v165_v63 = vpop.permute.xlu1 %164  ;;  %v163_v0 = vpop.permute.xlu0 %162 }
  0xc9   :  { %v166_v1 = vsel %vm104_vm4, %v163_v0, %v165_v63 }
  0xca   :  { %v168_v2 = vadd.f32 %v166_v1, %v157_v62 }
  0xcc   :  { %169 = vst [vmem:[#allocation7] sm:$0xff] %v168_v2 }
  0xcd   :  { %256 = shalt.err (!%p253_p12)
}
  0xce   :  { %s257_s21 = scalar_lea.hbm %s354_s2, 128 }
  0xcf   :  { %p258_p13 = scmp.ne.s32.totalorder %s354_s2, %s257_s21  ;;  %p261_p0 = scmp.lt.u32.totalorder %s257_s21, %s354_s2 }
  0xd1   :  { %p263_p1 = pnand %p261_p0, %p258_p13 }
  0xd3   :  { %266 = shalt.err (!%p263_p1)
}
  0xd4   :  { %179 = dma.vmem_to_hbm [thread:$0]  %s177_s17, 128, %s354_s2, [#allocation4]  }
  0xd5   :  { %271 = dma.done.wait [#allocation4], 128  }
  0xd6   :  { %272 = vsyncadd [#allocation4], 4294967168 }
  0xd7   :  { %183 = vsyncpa [#allocation3], 1 }
  0xd8   :  { %184 = vsyncpa [#allocation6], 1 }
  0xd9   :  { %185 = vsyncpa [#allocation4], 1 }

</bundles_post_ra>
